<compile_context>
chip_gen: v7x
topology: tpu7x:2x2x1
jax: 0.10.0
libtpu: 0.0.40
codegen_flags: <defaults>
</compile_context>

<pallas_src>
import jax
import jax.numpy as jnp
from jax.experimental import pallas as pl
from jax.experimental.pallas import tpu as pltpu


def _round_up(x, m):
    return ((x + m - 1) // m) * m


# --------------------------------------------------------------------------- #
# Kernel
# --------------------------------------------------------------------------- #
def deepfm_kernel(dense_ref, ids_ref, tbl_ref, wfused_ref, s_ref,
                  w0_ref, b1_ref, W2_ref, b2_ref, wf_ref, bf_ref,
                  out_ref):
    """One batch tile: embedding gather, FM wide part, Dnn deep part, sigmoid."""
    n_sparse = ids_ref.shape[1]
    vocab = tbl_ref.shape[0] // n_sparse
    K = tbl_ref.shape[1] // n_sparse          # embedding (latent) dim
    H1 = b1_ref.shape[1]                      # first Dnn hidden width

    ids = ids_ref[...]                        # [TB, n_sparse] int32
    dense = dense_ref[...]                    # [TB, n_dense] f32

    # ---- in-kernel embedding lookup: one-hot @ block-diag(tables) on the MXU ----
    vocab_iota = jax.lax.broadcasted_iota(jnp.int32, (1, vocab), 1)
    onehots = [(ids[:, f:f + 1] == vocab_iota).astype(jnp.float32)
               for f in range(n_sparse)]
    onehot = jnp.concatenate(onehots, axis=-1)                    # [TB, n_sparse*vocab]
    emb = jnp.dot(onehot.astype(jnp.bfloat16), tbl_ref[...],
                  preferred_element_type=jnp.float32)             # [TB, n_sparse*K]

    # torch: x = cat([sparse_embeds, dense_inputs], dim=-1)
    x = jnp.concatenate([emb, dense], axis=-1)                    # [TB, fea_num] f32
    x_bf = x.astype(jnp.bfloat16)

    # ---- single fused lane-dense matmul: x @ [W1 | w2 | w1 | 0-pad] ----
    fused = jnp.dot(x_bf, wfused_ref[...],
                    preferred_element_type=jnp.float32)           # [TB, 128]
    h1_pre = fused[:, 0:H1]                                       # x @ W1
    xw2 = fused[:, H1:H1 + K]                                     # x @ w2
    first = fused[:, H1 + K:H1 + K + 1] + w0_ref[...]             # x @ w1 + w0

    # ---- FM second order: 0.5 * (sum_k (x@w2)^2 - sum_f x^2 * sum_k w2^2) ----
    second_pos = jnp.sum(xw2 * xw2, axis=-1, keepdims=True)
    second_neg = jnp.sum((x * x) * s_ref[...], axis=-1, keepdims=True)
    wide = first + 0.5 * (second_pos - second_neg)

    # ---- Dnn deep part: Linear -> ReLU -> Linear -> ReLU -> Dropout(p=0.0) ----
    h1 = jnp.maximum(h1_pre + b1_ref[...], 0.0)
    h2 = jnp.dot(h1.astype(jnp.bfloat16), W2_ref[...],
                 preferred_element_type=jnp.float32) + b2_ref[...]
    h2 = jnp.maximum(h2, 0.0)
    # Dropout(p=0.0) is the identity.

    # ---- final Linear(H2 -> 1) as VPU multiply + lane reduce (no N=1 MXU pass) ----
    deep = jnp.sum(h2 * wf_ref[...], axis=-1, keepdims=True) + bf_ref[...]

    out_ref[...] = jax.nn.sigmoid(wide + deep)


# --------------------------------------------------------------------------- #
# Parameter preparation (done once, outside the kernel)
# --------------------------------------------------------------------------- #
def prepare_deepfm_params(emb_tables, params):
    n_sparse = len(emb_tables)
    vocab, K = emb_tables[0].shape
    fea_num, H1 = params["W1"].shape
    H2 = params["W2"].shape[1]

    # Block-diagonal stack of embedding tables: one-hot gather == concat of lookups.
    tbl = jnp.zeros((n_sparse * vocab, n_sparse * K), jnp.float32)
    for f, t in enumerate(emb_tables):
        tbl = tbl.at[f * vocab:(f + 1) * vocab, f * K:(f + 1) * K].set(t)

    # Fused x-side RHS: [W1 | w2 | w1], zero-padded to a 128-lane multiple
    # (resident in VMEM, so padding it is free; the streamed x is NOT padded).
    wf_cols = jnp.concatenate([params["W1"], params["w2"], params["w1"]], axis=1)
    n_pad = (-wf_cols.shape[1]) % 128
    wfused = jnp.pad(wf_cols, ((0, 0), (0, n_pad)))

    # Precomputed s[f] = sum_k w2[f,k]^2 (hoisted out of the kernel).
    s = jnp.sum(params["w2"] * params["w2"], axis=1)[None, :]        # [1, fea_num]

    return {
        "tbl": tbl.astype(jnp.bfloat16),
        "wfused": wfused.astype(jnp.bfloat16),
        "s": s.astype(jnp.float32),
        "w0": params["w0"].reshape(1, 1).astype(jnp.float32),
        "b1": params["b1"].reshape(1, H1).astype(jnp.float32),
        "W2": params["W2"].astype(jnp.bfloat16),
        "b2": params["b2"].reshape(1, H2).astype(jnp.float32),
        "wf": params["Wf"].reshape(1, H2).astype(jnp.float32),
        "bf": params["bf"].reshape(1, 1).astype(jnp.float32),
    }


# --------------------------------------------------------------------------- #
# Wrapper: grid over batch, weights resident in VMEM
# --------------------------------------------------------------------------- #
def deepfm_forward(dense, sparse_ids, prepped, *, batch_tile=512):
    """dense: [B, n_dense] f32, sparse_ids: [B, n_sparse] int32."""
    B, n_dense = dense.shape
    n_sparse = sparse_ids.shape[1]

    TB = min(batch_tile, _round_up(B, 8))
    Bp = _round_up(B, TB)
    if Bp != B:
        dense = jnp.pad(dense, ((0, Bp - B), (0, 0)))
        sparse_ids = jnp.pad(sparse_ids, ((0, Bp - B), (0, 0)))

    def resident(shape):
        return pl.BlockSpec(shape, lambda i: (0, 0))

    out = pl.pallas_call(
        deepfm_kernel,
        out_shape=jax.ShapeDtypeStruct((Bp, 1), jnp.float32),
        grid=(Bp // TB,),
        in_specs=[
            pl.BlockSpec((TB, n_dense), lambda i: (i, 0)),     # streamed
            pl.BlockSpec((TB, n_sparse), lambda i: (i, 0)),    # streamed (int32 ids)
            resident(prepped["tbl"].shape),
            resident(prepped["wfused"].shape),
            resident(prepped["s"].shape),
            resident(prepped["w0"].shape),
            resident(prepped["b1"].shape),
            resident(prepped["W2"].shape),
            resident(prepped["b2"].shape),
            resident(prepped["wf"].shape),
            resident(prepped["bf"].shape),
        ],
        out_specs=pl.BlockSpec((TB, 1), lambda i: (i, 0)),
        compiler_params=pltpu.CompilerParams(
            dimension_semantics=("parallel",)),
    )(dense.astype(jnp.float32), sparse_ids.astype(jnp.int32),
      prepped["tbl"], prepped["wfused"], prepped["s"], prepped["w0"],
      prepped["b1"], prepped["W2"], prepped["b2"], prepped["wf"], prepped["bf"])

    return out[:B, 0]


# --------------------------------------------------------------------------- #
# Pure-JAX reference (mirrors the kernel's bf16 matmul-operand casts)
# --------------------------------------------------------------------------- #
def deepfm_reference(dense, sparse_ids, emb_tables, params):
    f32 = jnp.float32
    tbls = [t.astype(jnp.bfloat16).astype(f32) for t in emb_tables]
    embs = [jnp.take(tbls[i], sparse_ids[:, i], axis=0) for i in range(len(emb_tables))]
    x = jnp.concatenate(embs + [dense.astype(f32)], axis=-1)
    xb = x.astype(jnp.bfloat16)

    w1b = params["w1"].astype(jnp.bfloat16)
    w2b = params["w2"].astype(jnp.bfloat16)
    W1b = params["W1"].astype(jnp.bfloat16)
    W2b = params["W2"].astype(jnp.bfloat16)

    first = params["w0"].reshape(1, 1) + jnp.dot(xb, w1b, preferred_element_type=f32)
    xw2 = jnp.dot(xb, w2b, preferred_element_type=f32)
    s = jnp.sum(params["w2"] ** 2, axis=1)[None, :]
    second = 0.5 * (jnp.sum(xw2 * xw2, axis=-1, keepdims=True)
                    - jnp.sum((x * x) * s, axis=-1, keepdims=True))

    h = jnp.maximum(jnp.dot(xb, W1b, preferred_element_type=f32)
                    + params["b1"].reshape(1, -1), 0.0)
    h = jnp.maximum(jnp.dot(h.astype(jnp.bfloat16), W2b, preferred_element_type=f32)
                    + params["b2"].reshape(1, -1), 0.0)
    deep = jnp.sum(h * params["Wf"].reshape(1, -1), axis=-1, keepdims=True) \
           + params["bf"].reshape(1, 1)

    return jax.nn.sigmoid(first + second + deep)[:, 0]


# --------------------------------------------------------------------------- #
# Demo / self-test
# --------------------------------------------------------------------------- #
if __name__ == "__main__":
    # Configuration (small shapes consistent with the module's __init__)
    B = 8
    n_dense = 3
    n_sparse = 5
    feat_num = 10             # vocabulary size of each sparse feature
    embed_dim = 8             # latent_dim
    fea_num = n_dense + n_sparse * embed_dim            # 43
    hidden_units = [fea_num, 64, 32]                    # hidden_units.insert(0, fea_num)

    key = jax.random.PRNGKey(0)
    keys = jax.random.split(key, 16)

    emb_tables = [jax.random.normal(keys[i], (feat_num, embed_dim), jnp.float32)
                  for i in range(n_sparse)]

    params = {
        # FM part
        "w0": jnp.zeros((1, 1), jnp.float32),
        "w1": jax.random.uniform(keys[5], (fea_num, 1), jnp.float32),
        "w2": jax.random.uniform(keys[6], (fea_num, embed_dim), jnp.float32),
        # Dnn part (weights stored as [in, out])
        "W1": jax.random.normal(keys[7], (hidden_units[0], hidden_units[1]), jnp.float32) * 0.1,
        "b1": jnp.zeros((1, hidden_units[1]), jnp.float32),
        "W2": jax.random.normal(keys[8], (hidden_units[1], hidden_units[2]), jnp.float32) * 0.1,
        "b2": jnp.zeros((1, hidden_units[2]), jnp.float32),
        # final linear hidden_units[-1] -> 1
        "Wf": jax.random.normal(keys[9], (hidden_units[2], 1), jnp.float32) * 0.1,
        "bf": jnp.zeros((1, 1), jnp.float32),
    }

    # Inputs: dense floats + sparse integer ids (int32 end-to-end).
    dense_part = jax.random.normal(keys[10], (B, n_dense), jnp.float32)
    sparse_ids = jax.random.randint(keys[11], (B, n_sparse), 0, feat_num, dtype=jnp.int32)

    prepped = prepare_deepfm_params(emb_tables, params)
    out = deepfm_forward(dense_part, sparse_ids, prepped)
    jax.block_until_ready(out)

    ref = deepfm_reference(dense_part, sparse_ids, emb_tables, params)
    jax.block_until_ready(ref)

    assert out.shape == (B,)
    assert bool(jnp.all(jnp.isfinite(out)))
    assert bool(jnp.allclose(out, ref, atol=1e-2)), \
        f"max abs diff {float(jnp.max(jnp.abs(out - ref)))}"
    print("KERNEL_OK")
</pallas_src>

<mosaic_0001>
module attributes {stable_mosaic.version = 11 : i64} {
  func.func @deepfm_kernel(%arg0: i32, %arg1: memref<8x3xf32, #tpu.memory_space<vmem>>, %arg2: memref<8x5xi32, #tpu.memory_space<vmem>>, %arg3: memref<50x40xbf16, #tpu.memory_space<vmem>>, %arg4: memref<43x128xbf16, #tpu.memory_space<vmem>>, %arg5: memref<1x43xf32, #tpu.memory_space<vmem>>, %arg6: memref<1x1xf32, #tpu.memory_space<vmem>>, %arg7: memref<1x64xf32, #tpu.memory_space<vmem>>, %arg8: memref<64x32xbf16, #tpu.memory_space<vmem>>, %arg9: memref<1x32xf32, #tpu.memory_space<vmem>>, %arg10: memref<1x32xf32, #tpu.memory_space<vmem>>, %arg11: memref<1x1xf32, #tpu.memory_space<vmem>>, %arg12: memref<8x1xf32, #tpu.memory_space<vmem>>) attributes {dimension_semantics = [#tpu.dimension_semantics<parallel>], iteration_bounds = array<i64: 1>, scalar_prefetch = 0 : i64, scratch_operands = 0 : i64, tpu.core_type = #tpu.core_type<tc>, window_params = [{transform_indices = @transform_0, window_bounds = array<i64: 8, 3>}, {transform_indices = @transform_1, window_bounds = array<i64: 8, 5>}, {pipeline_mode = #tpu.pipeline_mode<synchronous>, transform_indices = @transform_2, window_bounds = array<i64: 50, 40>}, {pipeline_mode = #tpu.pipeline_mode<synchronous>, transform_indices = @transform_3, window_bounds = array<i64: 43, 128>}, {pipeline_mode = #tpu.pipeline_mode<synchronous>, transform_indices = @transform_4, window_bounds = array<i64: 1, 43>}, {pipeline_mode = #tpu.pipeline_mode<synchronous>, transform_indices = @transform_5, window_bounds = array<i64: 1, 1>}, {pipeline_mode = #tpu.pipeline_mode<synchronous>, transform_indices = @transform_6, window_bounds = array<i64: 1, 64>}, {pipeline_mode = #tpu.pipeline_mode<synchronous>, transform_indices = @transform_7, window_bounds = array<i64: 64, 32>}, {pipeline_mode = #tpu.pipeline_mode<synchronous>, transform_indices = @transform_8, window_bounds = array<i64: 1, 32>}, {pipeline_mode = #tpu.pipeline_mode<synchronous>, transform_indices = @transform_9, window_bounds = array<i64: 1, 32>}, {pipeline_mode = #tpu.pipeline_mode<synchronous>, transform_indices = @transform_10, window_bounds = array<i64: 1, 1>}, {transform_indices = @transform_11, window_bounds = array<i64: 8, 1>}]} {
    %c0 = arith.constant 0 : index
    %c0_0 = arith.constant 0 : index
    %0 = vector.load %arg2[%c0, %c0_0] : memref<8x5xi32, #tpu.memory_space<vmem>>, vector<8x5xi32>
    %c0_1 = arith.constant 0 : index
    %c0_2 = arith.constant 0 : index
    %1 = vector.load %arg1[%c0_1, %c0_2] : memref<8x3xf32, #tpu.memory_space<vmem>>, vector<8x3xf32>
    %2 = tpu.iota {dimensions = array<i32: 1>} : vector<1x10xi32>
    %3 = vector.extract_strided_slice %0 {offsets = [0, 0], sizes = [8, 1], strides = [1, 1]} : vector<8x5xi32> to vector<8x1xi32>
    %4 = vector.broadcast %3 : vector<8x1xi32> to vector<8x10xi32>
    %5 = vector.broadcast %2 : vector<1x10xi32> to vector<8x10xi32>
    %6 = arith.cmpi eq, %4, %5 : vector<8x10xi32>
    %7 = arith.extui %6 : vector<8x10xi1> to vector<8x10xi32>
    %8 = arith.sitofp %7 : vector<8x10xi32> to vector<8x10xf32>
    %9 = vector.extract_strided_slice %0 {offsets = [0, 1], sizes = [8, 1], strides = [1, 1]} : vector<8x5xi32> to vector<8x1xi32>
    %10 = vector.broadcast %9 : vector<8x1xi32> to vector<8x10xi32>
    %11 = vector.broadcast %2 : vector<1x10xi32> to vector<8x10xi32>
    %12 = arith.cmpi eq, %10, %11 : vector<8x10xi32>
    %13 = arith.extui %12 : vector<8x10xi1> to vector<8x10xi32>
    %14 = arith.sitofp %13 : vector<8x10xi32> to vector<8x10xf32>
    %15 = vector.extract_strided_slice %0 {offsets = [0, 2], sizes = [8, 1], strides = [1, 1]} : vector<8x5xi32> to vector<8x1xi32>
    %16 = vector.broadcast %15 : vector<8x1xi32> to vector<8x10xi32>
    %17 = vector.broadcast %2 : vector<1x10xi32> to vector<8x10xi32>
    %18 = arith.cmpi eq, %16, %17 : vector<8x10xi32>
    %19 = arith.extui %18 : vector<8x10xi1> to vector<8x10xi32>
    %20 = arith.sitofp %19 : vector<8x10xi32> to vector<8x10xf32>
    %21 = vector.extract_strided_slice %0 {offsets = [0, 3], sizes = [8, 1], strides = [1, 1]} : vector<8x5xi32> to vector<8x1xi32>
    %22 = vector.broadcast %21 : vector<8x1xi32> to vector<8x10xi32>
    %23 = vector.broadcast %2 : vector<1x10xi32> to vector<8x10xi32>
    %24 = arith.cmpi eq, %22, %23 : vector<8x10xi32>
    %25 = arith.extui %24 : vector<8x10xi1> to vector<8x10xi32>
    %26 = arith.sitofp %25 : vector<8x10xi32> to vector<8x10xf32>
    %27 = vector.extract_strided_slice %0 {offsets = [0, 4], sizes = [8, 1], strides = [1, 1]} : vector<8x5xi32> to vector<8x1xi32>
    %28 = vector.broadcast %27 : vector<8x1xi32> to vector<8x10xi32>
    %29 = vector.broadcast %2 : vector<1x10xi32> to vector<8x10xi32>
    %30 = arith.cmpi eq, %28, %29 : vector<8x10xi32>
    %31 = arith.extui %30 : vector<8x10xi1> to vector<8x10xi32>
    %32 = arith.sitofp %31 : vector<8x10xi32> to vector<8x10xf32>
    %33 = tpu.concatenate %8, %14, %20, %26, %32 in 1 : vector<8x10xf32>, vector<8x10xf32>, vector<8x10xf32>, vector<8x10xf32>, vector<8x10xf32> -> vector<8x50xf32>
    %34 = arith.truncf %33 : vector<8x50xf32> to vector<8x50xbf16>
    %c0_3 = arith.constant 0 : index
    %c0_4 = arith.constant 0 : index
    %35 = vector.load %arg3[%c0_3, %c0_4] : memref<50x40xbf16, #tpu.memory_space<vmem>>, vector<50x40xbf16>
    %cst = arith.constant dense<0.000000e+00> : vector<8x40xf32>
    %36 = tpu.matmul %34, %35, %cst {dimension_numbers = #tpu.dot_dimension_numbers<[1], [0], [0], [1], [0, 0, 1, 1], [], []>} : vector<8x50xbf16>, vector<50x40xbf16>, vector<8x40xf32> -> vector<8x40xf32>
    %37 = tpu.concatenate %36, %1 in 1 : vector<8x40xf32>, vector<8x3xf32> -> vector<8x43xf32>
    %38 = arith.truncf %37 : vector<8x43xf32> to vector<8x43xbf16>
    %c0_5 = arith.constant 0 : index
    %c0_6 = arith.constant 0 : index
    %39 = vector.load %arg4[%c0_5, %c0_6] : memref<43x128xbf16, #tpu.memory_space<vmem>>, vector<43x128xbf16>
    %cst_7 = arith.constant dense<0.000000e+00> : vector<8x128xf32>
    %40 = tpu.matmul %38, %39, %cst_7 {dimension_numbers = #tpu.dot_dimension_numbers<[1], [0], [0], [1], [0, 0, 1, 1], [], []>} : vector<8x43xbf16>, vector<43x128xbf16>, vector<8x128xf32> -> vector<8x128xf32>
    %41 = vector.extract_strided_slice %40 {offsets = [0, 0], sizes = [8, 64], strides = [1, 1]} : vector<8x128xf32> to vector<8x64xf32>
    %42 = vector.extract_strided_slice %40 {offsets = [0, 64], sizes = [8, 8], strides = [1, 1]} : vector<8x128xf32> to vector<8x8xf32>
    %43 = vector.extract_strided_slice %40 {offsets = [0, 72], sizes = [8, 1], strides = [1, 1]} : vector<8x128xf32> to vector<8x1xf32>
    %c0_8 = arith.constant 0 : index
    %c0_9 = arith.constant 0 : index
    %44 = vector.load %arg6[%c0_8, %c0_9] : memref<1x1xf32, #tpu.memory_space<vmem>>, vector<1x1xf32>
    %45 = vector.broadcast %44 : vector<1x1xf32> to vector<8x1xf32>
    %46 = arith.addf %43, %45 : vector<8x1xf32>
    %47 = arith.mulf %42, %42 : vector<8x8xf32>
    %cst_10 = arith.constant dense<0.000000e+00> : vector<8xf32>
    %48 = vector.multi_reduction <add>, %47, %cst_10 [1] : vector<8x8xf32> to vector<8xf32>
    %49 = vector.shape_cast %48 : vector<8xf32> to vector<8x1xf32>
    %50 = arith.mulf %37, %37 : vector<8x43xf32>
    %c0_11 = arith.constant 0 : index
    %c0_12 = arith.constant 0 : index
    %51 = vector.load %arg5[%c0_11, %c0_12] : memref<1x43xf32, #tpu.memory_space<vmem>>, vector<1x43xf32>
    %52 = vector.broadcast %51 : vector<1x43xf32> to vector<8x43xf32>
    %53 = arith.mulf %50, %52 : vector<8x43xf32>
    %cst_13 = arith.constant dense<0.000000e+00> : vector<8xf32>
    %54 = vector.multi_reduction <add>, %53, %cst_13 [1] : vector<8x43xf32> to vector<8xf32>
    %55 = vector.shape_cast %54 : vector<8xf32> to vector<8x1xf32>
    %56 = arith.subf %49, %55 : vector<8x1xf32>
    %cst_14 = arith.constant 5.000000e-01 : f32
    %57 = vector.broadcast %cst_14 : f32 to vector<8x1xf32>
    %58 = arith.mulf %57, %56 : vector<8x1xf32>
    %59 = arith.addf %46, %58 : vector<8x1xf32>
    %c0_15 = arith.constant 0 : index
    %c0_16 = arith.constant 0 : index
    %60 = vector.load %arg7[%c0_15, %c0_16] : memref<1x64xf32, #tpu.memory_space<vmem>>, vector<1x64xf32>
    %61 = vector.broadcast %60 : vector<1x64xf32> to vector<8x64xf32>
    %62 = arith.addf %41, %61 : vector<8x64xf32>
    %cst_17 = arith.constant 0.000000e+00 : f32
    %63 = vector.broadcast %cst_17 : f32 to vector<8x64xf32>
    %64 = arith.maximumf %62, %63 : vector<8x64xf32>
    %65 = arith.truncf %64 : vector<8x64xf32> to vector<8x64xbf16>
    %c0_18 = arith.constant 0 : index
    %c0_19 = arith.constant 0 : index
    %66 = vector.load %arg8[%c0_18, %c0_19] : memref<64x32xbf16, #tpu.memory_space<vmem>>, vector<64x32xbf16>
    %cst_20 = arith.constant dense<0.000000e+00> : vector<8x32xf32>
    %67 = tpu.matmul %65, %66, %cst_20 {dimension_numbers = #tpu.dot_dimension_numbers<[1], [0], [0], [1], [0, 0, 1, 1], [], []>} : vector<8x64xbf16>, vector<64x32xbf16>, vector<8x32xf32> -> vector<8x32xf32>
    %c0_21 = arith.constant 0 : index
    %c0_22 = arith.constant 0 : index
    %68 = vector.load %arg9[%c0_21, %c0_22] : memref<1x32xf32, #tpu.memory_space<vmem>>, vector<1x32xf32>
    %69 = vector.broadcast %68 : vector<1x32xf32> to vector<8x32xf32>
    %70 = arith.addf %67, %69 : vector<8x32xf32>
    %cst_23 = arith.constant 0.000000e+00 : f32
    %71 = vector.broadcast %cst_23 : f32 to vector<8x32xf32>
    %72 = arith.maximumf %70, %71 : vector<8x32xf32>
    %c0_24 = arith.constant 0 : index
    %c0_25 = arith.constant 0 : index
    %73 = vector.load %arg10[%c0_24, %c0_25] : memref<1x32xf32, #tpu.memory_space<vmem>>, vector<1x32xf32>
    %74 = vector.broadcast %73 : vector<1x32xf32> to vector<8x32xf32>
    %75 = arith.mulf %72, %74 : vector<8x32xf32>
    %cst_26 = arith.constant dense<0.000000e+00> : vector<8xf32>
    %76 = vector.multi_reduction <add>, %75, %cst_26 [1] : vector<8x32xf32> to vector<8xf32>
    %77 = vector.shape_cast %76 : vector<8xf32> to vector<8x1xf32>
    %c0_27 = arith.constant 0 : index
    %c0_28 = arith.constant 0 : index
    %78 = vector.load %arg11[%c0_27, %c0_28] : memref<1x1xf32, #tpu.memory_space<vmem>>, vector<1x1xf32>
    %79 = vector.broadcast %78 : vector<1x1xf32> to vector<8x1xf32>
    %80 = arith.addf %77, %79 : vector<8x1xf32>
    %81 = arith.addf %59, %80 : vector<8x1xf32>
    %82 = arith.negf %81 : vector<8x1xf32>
    %83 = math.exp %82 : vector<8x1xf32>
    %cst_29 = arith.constant 1.000000e+00 : f32
    %84 = vector.broadcast %cst_29 : f32 to vector<8x1xf32>
    %85 = arith.addf %84, %83 : vector<8x1xf32>
    %86 = arith.divf %84, %85 : vector<8x1xf32>
    %c0_30 = arith.constant 0 : index
    %c0_31 = arith.constant 0 : index
    %87 = vector.load %arg12[%c0_30, %c0_31] : memref<8x1xf32, #tpu.memory_space<vmem>>, vector<8x1xf32>
    tpu.vector_store %arg12[%c0_30, %c0_31], %86 {strides = array<i32>} : memref<8x1xf32, #tpu.memory_space<vmem>>, vector<8x1xf32>,
    return
  }
  func.func @transform_0(%arg0: i32) -> (i32, i32) {
    %c0_i32 = arith.constant 0 : i32
    %c0_i32_0 = arith.constant 0 : i32
    return %arg0, %c0_i32 : i32, i32
  }
  func.func @transform_1(%arg0: i32) -> (i32, i32) {
    %c0_i32 = arith.constant 0 : i32
    %c0_i32_0 = arith.constant 0 : i32
    return %arg0, %c0_i32 : i32, i32
  }
  func.func @transform_2(%arg0: i32) -> (i32, i32) {
    %c0_i32 = arith.constant 0 : i32
    %c0_i32_0 = arith.constant 0 : i32
    %c0_i32_1 = arith.constant 0 : i32
    return %c0_i32, %c0_i32_0 : i32, i32
  }
  func.func @transform_3(%arg0: i32) -> (i32, i32) {
    %c0_i32 = arith.constant 0 : i32
    %c0_i32_0 = arith.constant 0 : i32
    %c0_i32_1 = arith.constant 0 : i32
    return %c0_i32, %c0_i32_0 : i32, i32
  }
  func.func @transform_4(%arg0: i32) -> (i32, i32) {
    %c0_i32 = arith.constant 0 : i32
    %c0_i32_0 = arith.constant 0 : i32
    %c0_i32_1 = arith.constant 0 : i32
    return %c0_i32, %c0_i32_0 : i32, i32
  }
  func.func @transform_5(%arg0: i32) -> (i32, i32) {
    %c0_i32 = arith.constant 0 : i32
    %c0_i32_0 = arith.constant 0 : i32
    %c0_i32_1 = arith.constant 0 : i32
    return %c0_i32, %c0_i32_0 : i32, i32
  }
  func.func @transform_6(%arg0: i32) -> (i32, i32) {
    %c0_i32 = arith.constant 0 : i32
    %c0_i32_0 = arith.constant 0 : i32
    %c0_i32_1 = arith.constant 0 : i32
    return %c0_i32, %c0_i32_0 : i32, i32
  }
  func.func @transform_7(%arg0: i32) -> (i32, i32) {
    %c0_i32 = arith.constant 0 : i32
    %c0_i32_0 = arith.constant 0 : i32
    %c0_i32_1 = arith.constant 0 : i32
    return %c0_i32, %c0_i32_0 : i32, i32
  }
  func.func @transform_8(%arg0: i32) -> (i32, i32) {
    %c0_i32 = arith.constant 0 : i32
    %c0_i32_0 = arith.constant 0 : i32
    %c0_i32_1 = arith.constant 0 : i32
    return %c0_i32, %c0_i32_0 : i32, i32
  }
  func.func @transform_9(%arg0: i32) -> (i32, i32) {
    %c0_i32 = arith.constant 0 : i32
    %c0_i32_0 = arith.constant 0 : i32
    %c0_i32_1 = arith.constant 0 : i32
    return %c0_i32, %c0_i32_0 : i32, i32
  }
  func.func @transform_10(%arg0: i32) -> (i32, i32) {
    %c0_i32 = arith.constant 0 : i32
    %c0_i32_0 = arith.constant 0 : i32
    %c0_i32_1 = arith.constant 0 : i32
    return %c0_i32, %c0_i32_0 : i32, i32
  }
  func.func @transform_11(%arg0: i32) -> (i32, i32) {
    %c0_i32 = arith.constant 0 : i32
    %c0_i32_0 = arith.constant 0 : i32
    return %arg0, %c0_i32 : i32, i32
  }
}

</mosaic_0001>

<bundles_post_ra>
// kernel: tpu_custom_call.1
= control target key start
LH: loop header
LB: loop body
LE: loop exit
PB: predicated region body
PF: predicated region fallthrough
CT: control target
= control target key end

     0   :  { %v537_v0 = vmov 1   ;;  %v538_v2 = vmov 3   ;;  %v539_v3 = vmov 0.0   ;;  %v540_v4 = vmov 2   ;;  %s544_s26 = smov 10   ;;  %s545_s30 = smov 30   ;;  %s696_s1 = inlined_call_operand.vmem [shape: s32[8,5], index: 1, kind: input, shape index: {}]   ;;  %s697_s2 = inlined_call_operand.vmem [shape: bf16[50,40], index: 2, kind: input, shape index: {}]   ;;  %s698_s3 = inlined_call_operand.vmem [shape: bf16[43,128], index: 3, kind: input, shape index: {}]   ;;  %s699_s0 = inlined_call_operand.vmem [shape: f32[8,3], index: 0, kind: input, shape index: {}]   ;;  %s700_s7 = inlined_call_operand.vmem [shape: bf16[64,32], index: 7, kind: input, shape index: {}]   ;;  %s701_s4 = inlined_call_operand.vmem [shape: f32[1,43], index: 4, kind: input, shape index: {}]   ;;  %s702_s6 = inlined_call_operand.vmem [shape: f32[1,64], index: 6, kind: input, shape index: {}]   ;;  %s703_s5 = inlined_call_operand.<no memory space> [shape: f32[1,1], index: 5, kind: input, shape index: {}]   ;;  %s704_s10 = inlined_call_operand.<no memory space> [shape: f32[1,1], index: 10, kind: input, shape index: {}]   ;;  %s705_s8 = inlined_call_operand.vmem [shape: f32[1,32], index: 8, kind: input, shape index: {}]   ;;  %s706_s9 = inlined_call_operand.vmem [shape: f32[1,32], index: 9, kind: input, shape index: {}]   ;;  %s707_s11 = inlined_call_operand.vmem [shape: f32[8,1], index: 11, kind: output, shape index: {}]  }
   0x1   :  { %516 = vset.pattern.permute.xlu0 %v537_v0  ;;  %v43_v1 = vld [vmem:[%s696_s1] sm:$0xff]  ;;  %518 = vset.pattern.permute.xlu1 %v538_v2  ;;  %v541_v5 = vmov 4   ;;  %v542_v6 = vmov 0   ;;  %v523_v8 = vld [vmem:[%s697_s2 + $0x8] sm:$0xff]   ;;  %v45_v9 = vlaneseq  ;;  %v524_v10 = vld [vmem:[%s697_s2 + $0x10] sm:$0xff]   ;;  %vm134_vm0 = vcmask 1040384  }
   0x2   :  { %54 = vperm.xlu0 %516, %v43_v1   ;;  %66 = vperm.xlu1 %518, %v43_v1   ;;  %v522_v7 = vld [vmem:[%s697_s2] sm:$0xff]   ;;  %v525_v11 = vld [vmem:[%s697_s2 + $0x18] ss:$0 sps:$4 sm:$0x11]   ;;  %vm543_vm3 = vmmov 0   ;;  %v527_v21 = vld [vmem:[%s698_s3 + $0x8] sm:$0xff]  }
   0x3   :  { %467 = vmatprep.subr.bf16.mxu0 %v539_v3  ;;  %479 = vmatprep.subr.bf16.mxu1 %v539_v3  ;;  %v46_v12 = vand.u32 127, %v45_v9  ;;  %v136_v13 = vsel %vm134_vm0, %v525_v11, 0  ;;  %v526_v18 = vld [vmem:[%s698_s3] sm:$0xff]   ;;  %s546_s12 = smov 20   ;;  %s547_s15 = smov 40   ;;  %vm93_vm7 = vcmask 80896  }
   0x4   :  { %468 = vmatpush3.bf16.msra.mxu0 %v522_v7  ;;  %475 = vmatprep.mubr.msk.bf16.mxu0 %vm543_vm3, %v539_v3  ;;  %v44_v23 = vld [vmem:[%s699_s0] sm:$0xff]  ;;  %vm95_vm8 = vcmask 162816   ;;  %vm97_vm9 = vcmask 244736   ;;  %vm99_vm10 = vcmask 326656   ;;  %vm130_vm11 = vcmask 408576   ;;  %v530_v52 = vld [vmem:[%s700_s7 + $0x8] sm:$0xff]  }
   0x5   :  { %469 = vmatprep.subr.bf16.mxu0 %v539_v3  ;;  %485 = vmatprep.mubr.msk.bf16.mxu1 %vm543_vm3, %v539_v3  ;;  %vm211_vm12 = vcmask 1044480   ;;  %v528_v36 = vld [vmem:[%s698_s3 + $0x10] sm:$0x3f]   ;;  %vm212_vm13 = vcmask 1045504   ;;  %v548_v37 = vmov 65535   ;;  %vm207_vm14 = vcmask 351232  }
   0x6   :  { %517 = vset.pattern.permute.xlu0 %v540_v4  ;;  %519 = vset.pattern.permute.xlu1 %v541_v5  ;;  %v213_v38 = vsel %vm211_vm12, 4294967295, %v548_v37  ;;  %v529_v45 = vld [vmem:[%s700_s7] sm:$0xff]   ;;  %v531_v54 = vld [vmem:[%s700_s7 + $0x10] sm:$0xff]   ;;  %v532_v55 = vld [vmem:[%s700_s7 + $0x18] sm:$0xff]   ;;  %vm341_vm15 = vcmask 523264   ;;  %vm273_vm0 = vcmask 64512   ;;  %v18_v4 = vstv %s704_s10 }
   0x7   :  { %60 = vperm.xlu0 %517, %v43_v1   ;;  %72 = vperm.xlu1 %519, %v43_v1   ;;  %v214_v39 = vsel %vm212_vm13, %v213_v38, 0  ;;  %v442_v46 = vld [vmem:[%s701_s4] ss:$0 sm:$0xff]  ;;  %19 = vst [vmem:[#allocation3] sm:$0x1] %v18_v4 }
   0x8   :  { %470 = vmatpush3.bf16.msra.mxu0 %v523_v8  ;;  %480 = vmatpush3.bf16.msra.mxu1 %v526_v18  ;;  %v216_v40 = vand.u32 %v528_v36, %v214_v39  ;;  %v443_v56 = vld [vmem:[%s702_s6] ss:$0 sm:$0xff] }
   0x9   :  { %471 = vmatprep.subr.bf16.mxu0 %v539_v3  ;;  %481 = vmatprep.subr.bf16.mxu1 %v539_v3 }
   0xb   :  { %520 = vset.pattern.permute.xlu1 %v542_v6  ;;  %521 = vset.pattern.permute.xlu0 %v541_v5  ;;  %v444_v5 = vld [vmem:[%s705_s8] ss:$0 sm:$0xff]  ;;  %s551_s8 = smov 56  }
   0xc   :  { %48 = vperm.xlu1 %520, %v43_v1   ;;  %472 = vmatpush3.bf16.msra.mxu0 %v524_v10  ;;  %v450_v10 = vld [vmem:[%s706_s9] ss:$0 sm:$0xff] }
   0xd   :  { %473 = vmatprep.subr.bf16.mxu0 %v539_v3  ;;  %482 = vmatpush3.bf16.msra.mxu1 %v527_v21 }
   0xe   :  { %483 = vmatprep.subr.bf16.mxu1 %v539_v3 }
  0x10   :  { %474 = vmatpush3.bf16.msra.mxu0 %v136_v13 }
  0x11   :  { %484 = vmatpush3.bf16.msra.mxu1 %v216_v40 }
  0x12   :  { %489 = vmatprep.subr.bf16.mxu1 %v539_v3 }
  0x81   :  { %v55_v14 = vpop.permute.xlu0 %54  ;;  %v67_v15 = vpop.permute.xlu1 %66 }
  0x82   :  { %vm56_vm1 = vcmp.eq.s32.totalorder %v55_v14, %v46_v12  ;;  %vm68_vm2 = vcmp.eq.s32.totalorder %v67_v15, %v46_v12 }
  0x83   :  { %v428_v16 = vsel %vm56_vm1, 1.0, %v539_v3  ;;  %v430_v17 = vsel %vm68_vm2, 1.0, %v539_v3  ;;  %vm394_vm1 = vcmask 261120   ;;  %vm421_vm2 = vcmask 7168  }
  0x84   :  { %78 = vrot.lane.b32.xlu0 %v428_v16, %s544_s26  ;;  %s549_s26 = smov 64   ;;  %v451_v16 = vld [vmem:[#allocation3] ss:$0 sm:$0xff] }
  0x86   :  { %v61_v19 = vpop.permute.xlu0 %60  ;;  %v73_v20 = vpop.permute.xlu1 %72 }
  0x87   :  { %vm62_vm4 = vcmp.eq.s32.totalorder %v61_v19, %v46_v12  ;;  %vm74_vm5 = vcmp.eq.s32.totalorder %v73_v20, %v46_v12 }
  0x88   :  { %v429_v22 = vsel %vm62_vm4, 1.0, %v539_v3  ;;  %86 = vrot.lane.b32.xlu0 %v430_v17, %s545_s30  ;;  %v431_v24 = vsel %vm74_vm5, 1.0, %v539_v3 }
  0x89   :  { %82 = vrot.lane.b32.xlu1 %v429_v22, %s546_s12 }
  0x8b   :  { %v49_v25 = vpop.permute.xlu1 %48 }
  0x8c   :  { %179 = vrot.lane.b32.xlu0 %v44_v23, %s547_s15  ;;  %vm50_vm6 = vcmp.eq.s32.totalorder %v49_v25, %v46_v12 }
  0x8d   :  { %90 = vrot.lane.b32.xlu1 %v431_v24, %s547_s15  ;;  %v427_v26 = vsel %vm50_vm6, 1.0, %v539_v3 }
  0xf6   :  { %v79_v27 = vpop.permute.xlu0 %78 }
  0xf7   :  { %v94_v28 = vsel %vm93_vm7, %v427_v26, %v79_v27 }
  0xfa   :  { %v87_v31 = vpop.permute.xlu0 %86 }
  0xfb   :  { %v83_v29 = vpop.permute.xlu1 %82 }
  0xfc   :  { %v96_v30 = vsel %vm95_vm8, %v94_v28, %v83_v29 }
  0xfd   :  { %v98_v33 = vsel %vm97_vm9, %v96_v30, %v87_v31 }
  0xfe   :  { %v180_v41 = vpop.permute.xlu0 %179 }
  0xff   :  { %v91_v32 = vpop.permute.xlu1 %90 }
 0x100   :  { %v100_v34 = vsel %vm99_vm10, %v98_v33, %v91_v32 }
 0x101   :  { %v101_v35 = vpack.c.bf16 %v100_v34, %v100_v34 }
 0x103   :  { %476 = vmatmul.mubr.msk.bf16.vlgmr.msra.gmra.mrb[0].mxu0 %vm130_vm11, %v101_v35 }
 0x1d6   :  { %v172_v42 = vpop.f32.mrb[0].mxu0 }
 0x1d7   :  { %v182_v43 = vsel %vm99_vm10, %v172_v42, %v180_v41  ;;  %v477_v44 = vpop.f32.mrb[1].mxu0 }
 0x1d8   :  { %v183_v47 = vpack.c.bf16 %v182_v43, %v182_v43  ;;  %v277_v48 = vmul.f32 %v182_v43, %v182_v43  ;;  %v175_v49 = vpop.f32.mrb[2].mxu0 }
 0x1d9   :  { %v478_v50 = vpop.f32.mrb[3].mxu0 }
 0x1da   :  { %486 = vmatmul.mubr.msk.bf16.vlgmr.msra.gmra.mrb[0].mxu1 %vm207_vm14, %v183_v47  ;;  %v285_v51 = vmul.f32 %v442_v46, %v277_v48 }
 0x1db   :  { %490 = vmatpush3.bf16.msra.mxu1 %v529_v45  ;;  %497 = vmatprep.mubr.msk.bf16.mxu1 %vm543_vm3, %v539_v3 }
 0x1dc   :  { %491 = vmatprep.subr.bf16.mxu1 %v539_v3  ;;  %v286_v53 = vsel %vm207_vm14, %v285_v51, 0.0 }
 0x1df   :  { %492 = vmatpush3.bf16.msra.mxu1 %v530_v52 }
 0x1e0   :  { %493 = vmatprep.subr.bf16.mxu1 %v539_v3 }
 0x1e3   :  { %494 = vmatpush3.bf16.msra.mxu1 %v531_v54 }
 0x1e4   :  { %495 = vmatprep.subr.bf16.mxu1 %v539_v3  ;;  %v16_v3 = vstv %s703_s5  ;;  %s550_s5 = smov 72  }
 0x1e5   :  { %17 = vst [vmem:[#allocation2] sm:$0x1] %v16_v3 }
 0x1e7   :  { %496 = vmatpush3.bf16.msra.mxu1 %v532_v55 }
 0x1ec   :  { %v441_v15 = vld [vmem:[#allocation2] ss:$0 sm:$0xff] }
 0x2ad   :  { %v252_v57 = vpop.f32.mrb[0].mxu1 }
 0x2ae   :  { %v268_v58 = vmul.f32 %v252_v57, %v252_v57  ;;  %v299_v59 = vadd.f32 %v443_v56, %v252_v57  ;;  %v487_v60 = vpop.f32.mrb[1].mxu1 }
 0x2af   :  { %v255_v61 = vpop.f32.mrb[2].mxu1 }
 0x2b0   :  { %v300_v62 = vmax.f32 %v299_v59, 0.0  ;;  %270 = vrot.lane.b32.xlu1 %v268_v58, %s549_s26  ;;  %v488_v63 = vpop.f32.mrb[3].mxu1 }
 0x2b2   :  { %v301_v0 = vpack.c.bf16 %v300_v62, %v300_v62 }
 0x2b4   :  { %498 = vmatmul.mubr.msk.bf16.vlgmr.msra.gmra.mrb[4].mxu1 %vm341_vm15, %v301_v0 }
 0x322   :  { %v271_v1 = vpop.permute.xlu1 %270 }
 0x323   :  { %v274_v2 = vsel %vm273_vm0, %v271_v1, 0.0 }
 0x324   :  { %275 = vadd.xlane.f32.xlu1 %v274_v2 }
 0x387   :  { %v379_v6 = vpop.f32.mrb[4].mxu1 }
 0x388   :  { %v380_v7 = vadd.f32 %v444_v5, %v379_v6  ;;  %v499_v8 = vpop.f32.mrb[5].mxu1 }
 0x389   :  { %v382_v9 = vpop.f32.mrb[6].mxu1 }
 0x38a   :  { %v385_v11 = vmax.f32 %v380_v7, 0.0  ;;  %v500_v12 = vpop.f32.mrb[7].mxu1 }
 0x38c   :  { %v393_v13 = vmul.f32 %v450_v10, %v385_v11 }
 0x38e   :  { %v395_v14 = vsel %vm394_vm1, %v393_v13, 0.0 }
 0x38f   :  { %396 = vadd.xlane.f32.xlu0 %v395_v14 }
 0x393   :  { %287 = vadd.xlane.f32.xlu0 %v286_v53 }
 0x3a9   :  { %264 = vrot.lane.b32.xlu0 %v441_v15, %s550_s5 }
 0x3b1   :  { %v276_v20 = vpop.xlane.xlu1 %275 }
 0x41c   :  { %v397_v17 = vpop.xlane.xlu0 %396 }
 0x41d   :  { %v405_v18 = vadd.f32 %v451_v16, %v397_v17 }
 0x41f   :  { %407 = vrot.lane.b32.xlu1 %v405_v18, %s550_s5 }
 0x420   :  { %v288_v19 = vpop.xlane.xlu0 %287 }
 0x421   :  { %v289_v22 = vsub.f32 %v276_v20, %v288_v19 }
 0x423   :  { %v290_v24 = vmul.f32 0.5, %v289_v22 }
 0x424   :  { %v265_v21 = vpop.permute.xlu0 %264 }
 0x425   :  { %v267_v23 = vadd.f32 %v265_v21, %v252_v57 }
 0x427   :  { %v291_v25 = vadd.f32 %v290_v24, %v267_v23 }
 0x491   :  { %v408_v26 = vpop.permute.xlu1 %407 }
 0x492   :  { %v410_v27 = vadd.f32 %v408_v26, %v291_v25 }
 0x494   :  { %v452_v28 = vmul.f32 -1.442695, %v410_v27 }
 0x496   :  { %533 = vpow2.f32 %v452_v28 }
 0x4a0   :  { %v534_v29 = vpop.eup %533 }
 0x4a1   :  { %v414_v30 = vadd.f32 1.0, %v534_v29 }
 0x4a3   :  { %535 = vrcp.f32 %v414_v30 }
 0x4ad   :  { %v536_v31 = vpop.eup %535 }
 0x4ae   :  { %418 = vrot.lane.b32.xlu1 %v536_v31, %s551_s8 }
 0x520   :  { %v419_v32 = vpop.permute.xlu1 %418 }
 0x521   :  { %422 = vst.msk [vmem:[%s707_s11] sm:$0xff] %vm421_vm2, %v419_v32 }

</bundles_post_ra>
